<compile_context>
chip_gen: v7x
topology: tpu7x:2x2x1
jax: 0.10.0
libtpu: 0.0.40
codegen_flags: <defaults>
</compile_context>

<pallas_src>
import functools

import jax
import jax.numpy as jnp
from jax import lax
from jax.experimental import pallas as pl
from jax.experimental.pallas import tpu as pltpu


def _round_up(x, m):
    return (x + m - 1) // m * m


# -----------------------------------------------------------------------------
# Pass 1: conv-as-matmul + per-row-tile BN sum / sum-of-squares partials.
# grid = (row tiles [parallel], contraction tiles [arbitrary, last]).
def _conv_stats_kernel(patches_ref, w_ref, y_ref, sum_ref, sumsq_ref):
    k = pl.program_id(1)
    nk = pl.num_programs(1)

    # y block is resident across k (index_map ignores k): f32 accumulator.
    @pl.when(k == 0)
    def _():
        y_ref[...] = jnp.zeros_like(y_ref)

    y_ref[...] += jnp.dot(patches_ref[...], w_ref[...],
                          preferred_element_type=jnp.float32)

    # Per-row-tile stats partials: written once per row tile (no cross-i sharing,
    # so the row axis can be megacore-parallel on v7x).
    @pl.when(k == nk - 1)
    def _():
        y = y_ref[...]
        sum_ref[...] = jnp.sum(y, axis=0, keepdims=True).reshape(sum_ref.shape)
        sumsq_ref[...] = jnp.sum(y * y, axis=0, keepdims=True).reshape(sumsq_ref.shape)


# -----------------------------------------------------------------------------
# Pass 2: fused BatchNorm affine + LeakyReLU per row tile (fully parallel,
# output aliased onto the pass-1 y buffer).
def _bn_lrelu_kernel(y_ref, scale_ref, shift_ref, out_ref, *, neg_slope):
    z = y_ref[...] * scale_ref[...] + shift_ref[...]
    out_ref[...] = jnp.where(z > 0, z, neg_slope * z).astype(out_ref.dtype)


def discriminator_block(x, weight, gamma, beta, *, kernel_size, stride, padding,
                        eps=1e-5, neg_slope=0.2):
    """x: (N, Cin, H, W); weight: (Cout, Cin, KH, KW); gamma/beta: (Cout,).
    Returns (N, Cout, OH, OW) NCHW, matching the PyTorch module's forward (train-mode BN)."""
    n, cin, h, w = x.shape
    cout = weight.shape[0]
    k, s, pad = kernel_size, stride, padding
    oh = (h + 2 * pad - k) // s + 1
    ow = (w + 2 * pad - k) // s + 1
    p_rows = n * oh * ow
    ckk = cin * k * k

    # ---- im2col via one fused XLA op, extracted directly in bf16 (pure data movement;
    # bit-identical to extracting in f32 then casting, at half the HBM traffic).
    # Output feature ordering is (Cin, KH, KW), matching PyTorch's OIHW weight flattening.
    patches = lax.conv_general_dilated_patches(
        x.astype(jnp.bfloat16), filter_shape=(k, k), window_strides=(s, s),
        padding=[(pad, pad), (pad, pad)],
        dimension_numbers=("NCHW", "OIHW", "NHWC"))          # (N, OH, OW, CKK) bf16
    patches = patches.reshape(p_rows, ckk)

    # ---- MXU / lane-friendly padding.
    cout_pad = 128 if cout <= 128 else _round_up(cout, 256)   # 256-align wide outputs (v6e/v7x MXU)
    ckk_pad = _round_up(ckk, 128)

    # Contraction tiling: keep the whole weight resident when it is small (DMA'd once,
    # constant block index), otherwise pick the largest {512,256,128} divisor of ckk_pad.
    if ckk_pad * cout_pad * 2 <= 4 * 1024 * 1024:
        tk = ckk_pad
    elif ckk_pad % 512 == 0:
        tk = 512
    elif ckk_pad % 256 == 0:
        tk = 256
    else:
        tk = 128
    nk = ckk_pad // tk

    # Row tile: largest power-of-two <= 2048 whose pass-1 per-step footprint stays under a
    # v7x-safe budget (v7x has only 64 MiB physical VMEM; v5e/v6e have 128 MiB).
    vmem_budget = 40 * 1024 * 1024
    tp = 2048
    while tp > 128:
        foot = 2 * tp * tk * 2 + 2 * tk * cout_pad * 2 + 2 * tp * cout_pad * 4
        if foot <= vmem_budget:
            break
        tp //= 2
    tp = min(tp, _round_up(p_rows, 16))                       # multiple of 16 (bf16 sublane packing)
    p_pad = _round_up(p_rows, tp)
    n_row_tiles = p_pad // tp

    patches = jnp.pad(patches, ((0, p_pad - p_rows), (0, ckk_pad - ckk)))
    w2d = weight.reshape(cout, ckk).T                          # (CKK, Cout)
    w2d = jnp.pad(w2d, ((0, ckk_pad - ckk), (0, cout_pad - cout))).astype(jnp.bfloat16)

    vmem_limit = 48 * 1024 * 1024                              # < 64 MiB physical on v7x

    # ---- pass 1: conv matmul + per-row-tile BN statistics ------------------------------------
    y, ysum_p, ysumsq_p = pl.pallas_call(
        _conv_stats_kernel,
        out_shape=(jax.ShapeDtypeStruct((p_pad, cout_pad), jnp.float32),
                   jax.ShapeDtypeStruct((n_row_tiles, 1, cout_pad), jnp.float32),
                   jax.ShapeDtypeStruct((n_row_tiles, 1, cout_pad), jnp.float32)),
        grid=(n_row_tiles, nk),
        in_specs=[
            pl.BlockSpec((tp, tk), lambda i, kk: (i, kk)),
            pl.BlockSpec((tk, cout_pad), lambda i, kk: (kk, 0)),
        ],
        out_specs=(
            pl.BlockSpec((tp, cout_pad), lambda i, kk: (i, 0)),
            pl.BlockSpec((1, 1, cout_pad), lambda i, kk: (i, 0, 0)),
            pl.BlockSpec((1, 1, cout_pad), lambda i, kk: (i, 0, 0)),
        ),
        compiler_params=pltpu.CompilerParams(
            dimension_semantics=("parallel", "arbitrary"),
            vmem_limit_bytes=vmem_limit),
    )(patches, w2d)

    # ---- tiny per-channel math in plain JAX: reduce partials -> mean/var -> affine scale/shift.
    inv_p = 1.0 / float(p_rows)                                # divisor = true row count
    ysum = jnp.sum(ysum_p, axis=(0, 1))                        # (Cout_pad,)
    ysumsq = jnp.sum(ysumsq_p, axis=(0, 1))
    mean = ysum * inv_p
    var = jnp.maximum(ysumsq * inv_p - mean * mean, 0.0)
    gamma_pad = jnp.pad(gamma.astype(jnp.float32), (0, cout_pad - cout))
    beta_pad = jnp.pad(beta.astype(jnp.float32), (0, cout_pad - cout))
    scale = gamma_pad * lax.rsqrt(var + eps)
    shift = beta_pad - mean * scale
    scale = scale.reshape(1, cout_pad)
    shift = shift.reshape(1, cout_pad)

    # ---- pass 2: normalize + LeakyReLU, parallel over row tiles, output aliased onto y ------
    out2d = pl.pallas_call(
        functools.partial(_bn_lrelu_kernel, neg_slope=neg_slope),
        out_shape=jax.ShapeDtypeStruct((p_pad, cout_pad), jnp.float32),
        grid=(n_row_tiles,),
        in_specs=[
            pl.BlockSpec((tp, cout_pad), lambda i: (i, 0)),
            pl.BlockSpec((1, cout_pad), lambda i: (0, 0)),
            pl.BlockSpec((1, cout_pad), lambda i: (0, 0)),
        ],
        out_specs=pl.BlockSpec((tp, cout_pad), lambda i: (i, 0)),
        input_output_aliases={0: 0},                           # reuse the f32 y HBM buffer
        compiler_params=pltpu.CompilerParams(
            dimension_semantics=("parallel",),
            vmem_limit_bytes=vmem_limit),
    )(y, scale, shift)

    out = out2d[:p_rows, :cout].reshape(n, oh, ow, cout)
    # TODO(synk): NHWC-tolerant consumers can take `out` directly and skip this HBM-bound transpose.
    return out.transpose(0, 3, 1, 2)


def _reference(x, weight, gamma, beta, *, kernel_size, stride, padding,
               eps=1e-5, neg_slope=0.2):
    """Pure-JAX reference of the PyTorch forward (train-mode BatchNorm).
    Conv operands are bf16-rounded to match the kernel's bf16 MXU path (f32 accumulation)."""
    xq = x.astype(jnp.bfloat16).astype(jnp.float32)
    wq = weight.astype(jnp.bfloat16).astype(jnp.float32)
    y = lax.conv_general_dilated(
        xq, wq, window_strides=(stride, stride),
        padding=[(padding, padding), (padding, padding)],
        dimension_numbers=("NCHW", "OIHW", "NCHW"))
    mean = jnp.mean(y, axis=(0, 2, 3), keepdims=True)
    var = jnp.mean((y - mean) ** 2, axis=(0, 2, 3), keepdims=True)
    y_hat = (y - mean) * lax.rsqrt(var + eps)
    z = y_hat * gamma.reshape(1, -1, 1, 1) + beta.reshape(1, -1, 1, 1)
    return jnp.where(z > 0, z, neg_slope * z)


if __name__ == "__main__":
    # DiscriminatorBlock(features_in=4, features_out=8, kernel_size=4, stride=2, padding=1)
    N, CIN, H, W = 2, 4, 16, 16
    COUT, K, S, P = 8, 4, 2, 1

    key = jax.random.PRNGKey(0)
    kx, kw = jax.random.split(key)
    x = jax.random.normal(kx, (N, CIN, H, W), dtype=jnp.float32)
    weight = 0.02 * jax.random.normal(kw, (COUT, CIN, K, K), dtype=jnp.float32)
    gamma = jnp.ones((COUT,), dtype=jnp.float32)   # BatchNorm2d default init
    beta = jnp.zeros((COUT,), dtype=jnp.float32)

    out = discriminator_block(x, weight, gamma, beta,
                              kernel_size=K, stride=S, padding=P)
    out = jax.block_until_ready(out)

    ref = _reference(x, weight, gamma, beta, kernel_size=K, stride=S, padding=P)
    assert out.shape == (N, COUT, H // 2, W // 2), out.shape
    max_err = float(jnp.max(jnp.abs(out - ref)))
    assert jnp.allclose(out, ref, atol=2e-3, rtol=2e-3), max_err

    print("KERNEL_OK")
</pallas_src>

<mosaic_0001>
module attributes {stable_mosaic.version = 11 : i64} {
  func.func @_conv_stats_kernel(%arg0: i32, %arg1: i32, %arg2: memref<128x128xbf16, #tpu.memory_space<vmem>>, %arg3: memref<128x128xbf16, #tpu.memory_space<vmem>>, %arg4: memref<128x128xf32, #tpu.memory_space<vmem>>, %arg5: memref<1x1x128xf32, #tpu.memory_space<vmem>>, %arg6: memref<1x1x128xf32, #tpu.memory_space<vmem>>) attributes {dimension_semantics = [#tpu.dimension_semantics<parallel>, #tpu.dimension_semantics<arbitrary>], iteration_bounds = array<i64: 1, 1>, scalar_prefetch = 0 : i64, scratch_operands = 0 : i64, tpu.core_type = #tpu.core_type<tc>, window_params = [{transform_indices = @transform_0, window_bounds = array<i64: 128, 128>}, {transform_indices = @transform_1, window_bounds = array<i64: 128, 128>}, {transform_indices = @transform_2, window_bounds = array<i64: 128, 128>}, {transform_indices = @transform_3, window_bounds = array<i64: 1, 1, 128>}, {transform_indices = @transform_4, window_bounds = array<i64: 1, 1, 128>}]} {
    %c0_i32 = arith.constant 0 : i32
    %0 = arith.cmpi eq, %arg1, %c0_i32 : i32
    %1 = arith.extui %0 : i1 to i32
    %c0_i32_0 = arith.constant 0 : i32
    %2 = arith.cmpi ne, %1, %c0_i32_0 : i32
    scf.if %2 {
      %cst_10 = arith.constant 0.000000e+00 : f32
      %12 = vector.broadcast %cst_10 : f32 to vector<128x128xf32>
      %c0_11 = arith.constant 0 : index
      %c0_12 = arith.constant 0 : index
      %13 = vector.load %arg4[%c0_11, %c0_12] : memref<128x128xf32, #tpu.memory_space<vmem>>, vector<128x128xf32>
      tpu.vector_store %arg4[%c0_11, %c0_12], %12 {strides = array<i32>} : memref<128x128xf32, #tpu.memory_space<vmem>>, vector<128x128xf32>,
    } else {
    }
    %c0 = arith.constant 0 : index
    %c0_1 = arith.constant 0 : index
    %3 = vector.load %arg4[%c0, %c0_1] : memref<128x128xf32, #tpu.memory_space<vmem>>, vector<128x128xf32>
    %c0_2 = arith.constant 0 : index
    %c0_3 = arith.constant 0 : index
    %4 = vector.load %arg2[%c0_2, %c0_3] : memref<128x128xbf16, #tpu.memory_space<vmem>>, vector<128x128xbf16>
    %c0_4 = arith.constant 0 : index
    %c0_5 = arith.constant 0 : index
    %5 = vector.load %arg3[%c0_4, %c0_5] : memref<128x128xbf16, #tpu.memory_space<vmem>>, vector<128x128xbf16>
    %cst = arith.constant dense<0.000000e+00> : vector<128x128xf32>
    %6 = tpu.matmul %4, %5, %cst {dimension_numbers = #tpu.dot_dimension_numbers<[1], [0], [0], [1], [0, 0, 1, 1], [], []>} : vector<128x128xbf16>, vector<128x128xbf16>, vector<128x128xf32> -> vector<128x128xf32>
    %7 = arith.addf %3, %6 : vector<128x128xf32>
    %c0_6 = arith.constant 0 : index
    %c0_7 = arith.constant 0 : index
    %8 = vector.load %arg4[%c0_6, %c0_7] : memref<128x128xf32, #tpu.memory_space<vmem>>, vector<128x128xf32>
    tpu.vector_store %arg4[%c0_6, %c0_7], %7 {strides = array<i32>} : memref<128x128xf32, #tpu.memory_space<vmem>>, vector<128x128xf32>,
    %c0_i32_8 = arith.constant 0 : i32
    %9 = arith.cmpi eq, %arg1, %c0_i32_8 : i32
    %10 = arith.extui %9 : i1 to i32
    %c0_i32_9 = arith.constant 0 : i32
    %11 = arith.cmpi ne, %10, %c0_i32_9 : i32
    scf.if %11 {
      %c0_10 = arith.constant 0 : index
      %c0_11 = arith.constant 0 : index
      %12 = vector.load %arg4[%c0_10, %c0_11] : memref<128x128xf32, #tpu.memory_space<vmem>>, vector<128x128xf32>
      %cst_12 = arith.constant dense<0.000000e+00> : vector<128xf32>
      %13 = vector.multi_reduction <add>, %12, %cst_12 [0] : vector<128x128xf32> to vector<128xf32>
      %14 = vector.shape_cast %13 : vector<128xf32> to vector<1x128xf32>
      %15 = vector.shape_cast %14 : vector<1x128xf32> to vector<1x1x128xf32>
      %c0_13 = arith.constant 0 : index
      %c0_14 = arith.constant 0 : index
      %c0_15 = arith.constant 0 : index
      %16 = vector.load %arg5[%c0_13, %c0_14, %c0_15] : memref<1x1x128xf32, #tpu.memory_space<vmem>>, vector<1x1x128xf32>
      tpu.vector_store %arg5[%c0_13, %c0_14, %c0_15], %15 {strides = array<i32>} : memref<1x1x128xf32, #tpu.memory_space<vmem>>, vector<1x1x128xf32>,
      %17 = arith.mulf %12, %12 : vector<128x128xf32>
      %cst_16 = arith.constant dense<0.000000e+00> : vector<128xf32>
      %18 = vector.multi_reduction <add>, %17, %cst_16 [0] : vector<128x128xf32> to vector<128xf32>
      %19 = vector.shape_cast %18 : vector<128xf32> to vector<1x128xf32>
      %20 = vector.shape_cast %19 : vector<1x128xf32> to vector<1x1x128xf32>
      %c0_17 = arith.constant 0 : index
      %c0_18 = arith.constant 0 : index
      %c0_19 = arith.constant 0 : index
      %21 = vector.load %arg6[%c0_17, %c0_18, %c0_19] : memref<1x1x128xf32, #tpu.memory_space<vmem>>, vector<1x1x128xf32>
      tpu.vector_store %arg6[%c0_17, %c0_18, %c0_19], %20 {strides = array<i32>} : memref<1x1x128xf32, #tpu.memory_space<vmem>>, vector<1x1x128xf32>,
    } else {
    }
    return
  }
  func.func @transform_0(%arg0: i32, %arg1: i32) -> (i32, i32) {
    %c0_i32 = arith.constant 0 : i32
    return %arg0, %arg1 : i32, i32
  }
  func.func @transform_1(%arg0: i32, %arg1: i32) -> (i32, i32) {
    %c0_i32 = arith.constant 0 : i32
    %c0_i32_0 = arith.constant 0 : i32
    return %arg1, %c0_i32 : i32, i32
  }
  func.func @transform_2(%arg0: i32, %arg1: i32) -> (i32, i32) {
    %c0_i32 = arith.constant 0 : i32
    %c0_i32_0 = arith.constant 0 : i32
    return %arg0, %c0_i32 : i32, i32
  }
  func.func @transform_3(%arg0: i32, %arg1: i32) -> (i32, i32, i32) {
    %c0_i32 = arith.constant 0 : i32
    %c0_i32_0 = arith.constant 0 : i32
    %c0_i32_1 = arith.constant 0 : i32
    return %arg0, %c0_i32, %c0_i32_0 : i32, i32, i32
  }
  func.func @transform_4(%arg0: i32, %arg1: i32) -> (i32, i32, i32) {
    %c0_i32 = arith.constant 0 : i32
    %c0_i32_0 = arith.constant 0 : i32
    %c0_i32_1 = arith.constant 0 : i32
    return %arg0, %c0_i32, %c0_i32_0 : i32, i32, i32
  }
}

</mosaic_0001>

<bundles_post_ra>
// kernel: tpu_custom_call.1
= control target key start
LH: loop header
LB: loop body
LE: loop exit
PB: predicated region body
PF: predicated region fallthrough
CT: control target
= control target key end

     0   :  { %10 = vsyncpa [#allocation3], 0  ;;  %s831_s0 = inlined_call_operand.hbm [shape: bf16[128,128], index: 0, kind: input, shape index: {}]   ;;  %s832_s1 = inlined_call_operand.hbm [shape: bf16[128,128], index: 1, kind: input, shape index: {}]   ;;  %s833_s2 = inlined_call_operand.hbm [shape: f32[128,128], index: 2, kind: output, shape index: {0}]   ;;  %s834_s3 = inlined_call_operand.hbm [shape: f32[1,1,128], index: 3, kind: output, shape index: {1}]   ;;  %s835_s4 = inlined_call_operand.hbm [shape: f32[1,1,128], index: 4, kind: output, shape index: {2}]  }
   0x1   :  { %11 = vsyncpa [#allocation6], 0 }
   0x2   :  { %12 = vsyncpa [#allocation4], 0 }
   0x3   :  { %13 = vsyncpa [#allocation9], 0  ;;  %s686_s15 = smov [#allocation2]   ;;  %s568_s19 = scalar_lea.hbm %s831_s0, 1024 }
   0x4   :  { %s19_s16 = sshll.u32 %s686_s15, 4  ;;  %p569_p0 = scmp.ne.s32.totalorder %s831_s0, %s568_s19  ;;  %s20_s16 = int_to_ptr.vmem [resolvable:$true] %s19_s16 }
   0x5   :  { %p572_p1 = scmp.lt.u32.totalorder %s568_s19, %s831_s0 }
   0x7   :  { %p574_p2 = pnand %p572_p1, %p569_p0 }
   0x9   :  { %577 = shalt.err (!%p574_p2)
}
   0xa   :  { %s578_s24 = scalar_lea.vmem %s20_s16, 1024  ;;  %p583_p4 = scmp.lt.s32.totalorder %s20_s16, %s20_s16 }
   0xb   :  { %p579_p3 = scmp.ne.s32.totalorder %s20_s16, %s578_s24  ;;  %p584_p5 = scmp.lt.s32.totalorder %s578_s24, %s578_s24 }
   0xd   :  { %p585_p6 = por %p584_p5, %p583_p4 }
   0xf   :  { %p586_p7 = pnand %p585_p6, %p579_p3 }
  0x11   :  { %589 = shalt.err (!%p586_p7)
}
  0x12   :  { %s687_s25 = smov 64   ;;  %s688_s26 = smov 4  }
  0x13   :  { %25 = dma.hbm_to_vmem [thread:$0]  %s831_s0, 1024, %s20_s16, [#allocation3], %s687_s25, %s687_s25, %s688_s26  }
  0x14   :  { %s689_s29 = smov [#allocation5]   ;;  %s590_s7 = scalar_lea.hbm %s832_s1, 1024 }
  0x15   :  { %s31_s30 = sshll.u32 %s689_s29, 4  ;;  %p591_p8 = scmp.ne.s32.totalorder %s832_s1, %s590_s7  ;;  %s32_s30 = int_to_ptr.vmem [resolvable:$true] %s31_s30 }
  0x16   :  { %p594_p9 = scmp.lt.u32.totalorder %s590_s7, %s832_s1 }
  0x18   :  { %p596_p10 = pnand %p594_p9, %p591_p8 }
  0x1a   :  { %599 = shalt.err (!%p596_p10)
}
  0x1b   :  { %s600_s12 = scalar_lea.vmem %s32_s30, 1024  ;;  %p605_p12 = scmp.lt.s32.totalorder %s32_s30, %s32_s30 }
  0x1c   :  { %p601_p11 = scmp.ne.s32.totalorder %s32_s30, %s600_s12  ;;  %p606_p13 = scmp.lt.s32.totalorder %s600_s12, %s600_s12 }
  0x1e   :  { %p607_p0 = por %p606_p13, %p605_p12 }
  0x20   :  { %p608_p1 = pnand %p607_p0, %p601_p11 }
  0x22   :  { %611 = shalt.err (!%p608_p1)
}
  0x23   :  { %37 = dma.hbm_to_vmem [thread:$0]  %s832_s1, 1024, %s32_s30, [#allocation6], %s687_s25, %s687_s25, %s688_s26  }
  0x24   :  { %678 = dma.done.wait [#allocation3], 1024  }
  0x25   :  { %679 = vsyncadd [#allocation3], 4294966272 }
  0x26   :  { %680 = dma.done.wait [#allocation6], 1024  }
  0x27   :  { %681 = vsyncadd [#allocation6], 4294966272  ;;  %v552_v0 = vld [vmem:[#allocation5] sm:$0xff]   ;;  %v553_v1 = vld [vmem:[#allocation5 + $0x8] sm:$0xff]   ;;  %s690_s1 = smov [#allocation7]  }
  0x28   :  { %494 = vmatprep.subr.bf16.mxu0 %v552_v0  ;;  %526 = vmatprep.subr.bf16.mxu1 %v552_v0  ;;  %v554_v2 = vld [vmem:[#allocation5 + $0x10] sm:$0xff]   ;;  %v555_v3 = vld [vmem:[#allocation5 + $0x18] sm:$0xff]   ;;  %v560_v4 = vld [vmem:[#allocation2] sm:$0xff]   ;;  %s422_s14 = sshll.u32 %s690_s1, 4  ;;  %s761_s14 = int_to_ptr.vmem [resolvable:$true] %s422_s14 }
  0x29   :  { %495 = vmatpush3.bf16.msra.mxu0 %v552_v0  ;;  %534 = vmatpush3.bf16.msra.mxu1 %v552_v0  ;;  %v556_v5 = vld [vmem:[#allocation5 + $0x20] sm:$0xff]   ;;  %v557_v7 = vld [vmem:[#allocation5 + $0x28] sm:$0xff]   ;;  %v558_v8 = vld [vmem:[#allocation5 + $0x30] sm:$0xff]   ;;  %s612_s15 = scalar_lea.vmem %s761_s14, 2048  ;;  %p617_p3 = scmp.lt.s32.totalorder %s761_s14, %s761_s14 }
  0x2a   :  { %496 = vmatprep.subr.bf16.mxu0 %v553_v1  ;;  %527 = vmatprep.subr.bf16.mxu1 %v553_v1  ;;  %v564_v6 = vld [vmem:[#allocation2 + $0x20] sm:$0xff]   ;;  %v559_v9 = vld [vmem:[#allocation5 + $0x38] sm:$0xff]   ;;  %v561_v10 = vld [vmem:[#allocation2 + $0x8] sm:$0xff]   ;;  %p613_p2 = scmp.ne.s32.totalorder %s761_s14, %s612_s15  ;;  %p618_p4 = scmp.lt.s32.totalorder %s612_s15, %s612_s15 }
  0x2b   :  { %510 = vmatprep.mubr.bf16.mxu0 %v560_v4  ;;  %518 = vmatprep.mubr.bf16.mxu1 %v564_v6  ;;  %v565_v11 = vld [vmem:[#allocation2 + $0x28] sm:$0xff]   ;;  %v562_v12 = vld [vmem:[#allocation2 + $0x10] sm:$0xff]   ;;  %v563_v14 = vld [vmem:[#allocation2 + $0x18] sm:$0xff]  }
  0x2c   :  { %v566_v13 = vld [vmem:[#allocation2 + $0x30] sm:$0xff]   ;;  %v567_v15 = vld [vmem:[#allocation2 + $0x38] sm:$0xff]   ;;  %p619_p5 = por %p618_p4, %p617_p3 }
  0x2d   :  { %497 = vmatpush3.bf16.msra.mxu0 %v553_v1  ;;  %535 = vmatpush3.bf16.msra.mxu1 %v553_v1 }
  0x2e   :  { %498 = vmatprep.subr.bf16.mxu0 %v554_v2  ;;  %528 = vmatprep.subr.bf16.mxu1 %v554_v2  ;;  %p620_p6 = pnand %p619_p5, %p613_p2 }
  0x31   :  { %499 = vmatpush3.bf16.msra.mxu0 %v554_v2  ;;  %536 = vmatpush3.bf16.msra.mxu1 %v554_v2 }
  0x32   :  { %500 = vmatprep.subr.bf16.mxu0 %v555_v3  ;;  %529 = vmatprep.subr.bf16.mxu1 %v555_v3 }
  0x35   :  { %501 = vmatpush3.bf16.msra.mxu0 %v555_v3  ;;  %537 = vmatpush3.bf16.msra.mxu1 %v555_v3 }
  0x36   :  { %502 = vmatprep.subr.bf16.mxu0 %v556_v5  ;;  %530 = vmatprep.subr.bf16.mxu1 %v556_v5 }
  0x39   :  { %503 = vmatpush3.bf16.msra.mxu0 %v556_v5  ;;  %538 = vmatpush3.bf16.msra.mxu1 %v556_v5 }
  0x3a   :  { %504 = vmatprep.subr.bf16.mxu0 %v557_v7  ;;  %531 = vmatprep.subr.bf16.mxu1 %v557_v7 }
  0x3d   :  { %505 = vmatpush3.bf16.msra.mxu0 %v557_v7  ;;  %539 = vmatpush3.bf16.msra.mxu1 %v557_v7 }
  0x3e   :  { %506 = vmatprep.subr.bf16.mxu0 %v558_v8  ;;  %532 = vmatprep.subr.bf16.mxu1 %v558_v8 }
  0x41   :  { %507 = vmatpush3.bf16.msra.mxu0 %v558_v8  ;;  %540 = vmatpush3.bf16.msra.mxu1 %v558_v8 }
  0x42   :  { %508 = vmatprep.subr.bf16.mxu0 %v559_v9  ;;  %533 = vmatprep.subr.bf16.mxu1 %v559_v9 }
  0x45   :  { %509 = vmatpush3.bf16.msra.mxu0 %v559_v9  ;;  %541 = vmatpush3.bf16.msra.mxu1 %v559_v9 }
  0x48   :  { %511 = vmatmul.mubr.bf16.vlgmr.msra.gmra.mrb[0].mxu0 %v561_v10  ;;  %519 = vmatmul.mubr.bf16.vlgmr.msra.gmra.mrb[0].mxu1 %v565_v11 }
  0x49   :  { %514 = vmatprep.mubr.bf16.mxu0 %v562_v12  ;;  %522 = vmatprep.mubr.bf16.mxu1 %v566_v13 }
  0x50   :  { %515 = vmatmul.mubr.bf16.gmra.mrb[4].mxu0 %v563_v14  ;;  %523 = vmatmul.mubr.bf16.gmra.mrb[4].mxu1 %v567_v15 }
 0x11b   :  { %v512_v16 = vpop.f32.mrb[0].mxu0  ;;  %v744_v17 = vpop.f32.mrb[0].mxu1 }
 0x11c   :  { %v243_v18 = vpop.f32.mrb[1].mxu0  ;;  %v746_v19 = vpop.f32.mrb[1].mxu1  ;;  %324 = vst [vmem:[#allocation7 + $0x10] sm:$0xff] %v512_v16  ;;  %332 = vst [vmem:[#allocation7 + $0x50] sm:$0xff] %v744_v17  ;;  %v381_v30 = vmul.f32 %v512_v16, %v512_v16 }
 0x11d   :  { %v513_v20 = vpop.f32.mrb[2].mxu0  ;;  %v748_v21 = vpop.f32.mrb[2].mxu1  ;;  %322 = vst [vmem:[#allocation7] sm:$0xff] %v243_v18  ;;  %330 = vst [vmem:[#allocation7 + $0x40] sm:$0xff] %v746_v19  ;;  %v379_v24 = vmul.f32 %v243_v18, %v243_v18 }
 0x11e   :  { %v246_v22 = vpop.f32.mrb[3].mxu0  ;;  %v751_v23 = vpop.f32.mrb[3].mxu1  ;;  %325 = vst [vmem:[#allocation7 + $0x18] sm:$0xff] %v513_v20  ;;  %333 = vst [vmem:[#allocation7 + $0x58] sm:$0xff] %v748_v21  ;;  %v382_v40 = vmul.f32 %v513_v20, %v513_v20 }
 0x11f   :  { %323 = vst [vmem:[#allocation7 + $0x8] sm:$0xff] %v246_v22  ;;  %v380_v25 = vmul.f32 %v246_v22, %v246_v22  ;;  %331 = vst [vmem:[#allocation7 + $0x48] sm:$0xff] %v751_v23  ;;  %v357_v26 = vadd.f32 %v246_v22, %v243_v18 }
 0x121   :  { %v358_v29 = vadd.f32 %v512_v16, %v357_v26  ;;  %v395_v31 = vadd.f32 %v380_v25, %v379_v24 }
 0x123   :  { %v516_v27 = vpop.f32.mrb[4].mxu0  ;;  %v756_v28 = vpop.f32.mrb[4].mxu1  ;;  %v359_v36 = vadd.f32 %v513_v20, %v358_v29  ;;  %v396_v37 = vadd.f32 %v395_v31, %v381_v30 }
 0x124   :  { %v259_v32 = vpop.f32.mrb[5].mxu0  ;;  %v291_v33 = vpop.f32.mrb[5].mxu1  ;;  %328 = vst [vmem:[#allocation7 + $0x30] sm:$0xff] %v516_v27  ;;  %336 = vst [vmem:[#allocation7 + $0x70] sm:$0xff] %v756_v28 }
 0x125   :  { %v517_v34 = vpop.f32.mrb[6].mxu0  ;;  %v758_v35 = vpop.f32.mrb[6].mxu1  ;;  %326 = vst [vmem:[#allocation7 + $0x20] sm:$0xff] %v259_v32  ;;  %334 = vst [vmem:[#allocation7 + $0x60] sm:$0xff] %v291_v33  ;;  %v360_v41 = vadd.f32 %v359_v36, %v259_v32  ;;  %v383_v42 = vmul.f32 %v259_v32, %v259_v32  ;;  %v397_v43 = vadd.f32 %v396_v37, %v382_v40 }
 0x126   :  { %v262_v38 = vpop.f32.mrb[7].mxu0  ;;  %v294_v39 = vpop.f32.mrb[7].mxu1  ;;  %329 = vst [vmem:[#allocation7 + $0x38] sm:$0xff] %v517_v34  ;;  %337 = vst [vmem:[#allocation7 + $0x78] sm:$0xff] %v758_v35 }
 0x127   :  { %327 = vst [vmem:[#allocation7 + $0x28] sm:$0xff] %v262_v38  ;;  %335 = vst [vmem:[#allocation7 + $0x68] sm:$0xff] %v294_v39  ;;  %v361_v44 = vadd.f32 %v360_v41, %v262_v38  ;;  %v384_v45 = vmul.f32 %v262_v38, %v262_v38 }
 0x128   :  { %623 = shalt.err (!%p620_p6)
}
 0x129   :  { %s624_s18 = scalar_lea.hbm %s833_s2, 2048 }
 0x12a   :  { %p625_p7 = scmp.ne.s32.totalorder %s833_s2, %s624_s18  ;;  %p628_p8 = scmp.lt.u32.totalorder %s624_s18, %s833_s2 }
 0x12c   :  { %p630_p9 = pnand %p628_p8, %p625_p7 }
 0x12e   :  { %633 = shalt.err (!%p630_p9)
}
 0x12f   :  { %s691_s23 = smov 128   ;;  %s692_s24 = smov 8   ;;  %v398_v46 = vadd.f32 %v397_v43, %v383_v42  ;;  %v362_v47 = vadd.f32 %v516_v27, %v361_v44  ;;  %v385_v48 = vmul.f32 %v516_v27, %v516_v27  ;;  %v386_v51 = vmul.f32 %v517_v34, %v517_v34 }
 0x130   :  { %428 = dma.vmem_to_hbm [thread:$0]  %s761_s14, 2048, %s833_s2, [#allocation4], %s691_s23, %s691_s23, %s692_s24   ;;  %v387_v52 = vmul.f32 %v746_v19, %v746_v19  ;;  %v388_v57 = vmul.f32 %v751_v23, %v751_v23  ;;  %v389_v60 = vmul.f32 %v744_v17, %v744_v17  ;;  %v390_v63 = vmul.f32 %v748_v21, %v748_v21 }
 0x131   :  { %v399_v49 = vadd.f32 %v398_v46, %v384_v45  ;;  %v363_v50 = vadd.f32 %v517_v34, %v362_v47  ;;  %v391_v0 = vmul.f32 %v291_v33, %v291_v33  ;;  %v392_v5 = vmul.f32 %v294_v39, %v294_v39  ;;  %s693_s2 = smov [#allocation8]   ;;  %s694_s28 = smov [#allocation10]  }
 0x132   :  { %v393_v8 = vmul.f32 %v756_v28, %v756_v28  ;;  %v394_v11 = vmul.f32 %v758_v35, %v758_v35  ;;  %s435_s27 = sshll.u32 %s693_s2, 4  ;;  %s445_s29 = sshll.u32 %s694_s28, 4  ;;  %s436_s27 = int_to_ptr.vmem [resolvable:$true] %s435_s27  ;;  %s799_s29 = int_to_ptr.vmem [resolvable:$true] %s445_s29 }
 0x133   :  { %v400_v53 = vadd.f32 %v399_v49, %v385_v48  ;;  %v364_v54 = vadd.f32 %v363_v50, %v746_v19  ;;  %s634_s30 = scalar_lea.vmem %s436_s27, 16  ;;  %s638_s5 = scalar_lea.vmem %s436_s27, 32 }
 0x134   :  { %p635_p10 = scmp.ne.s32.totalorder %s436_s27, %s634_s30  ;;  %p639_p11 = scmp.lt.s32.totalorder %s436_s27, %s436_s27 }
 0x135   :  { %v401_v55 = vadd.f32 %v400_v53, %v386_v51  ;;  %v365_v56 = vadd.f32 %v364_v54, %v751_v23  ;;  %p640_p12 = scmp.lt.s32.totalorder %s638_s5, %s634_s30 }
 0x137   :  { %v402_v58 = vadd.f32 %v401_v55, %v387_v52  ;;  %v366_v59 = vadd.f32 %v744_v17, %v365_v56  ;;  %p641_p13 = por %p640_p12, %p639_p11 }
 0x139   :  { %v403_v61 = vadd.f32 %v402_v58, %v388_v57  ;;  %v367_v62 = vadd.f32 %v748_v21, %v366_v59  ;;  %p642_p0 = pnand %p641_p13, %p635_p10 }
 0x13b   :  { %v404_v1 = vadd.f32 %v403_v61, %v389_v60  ;;  %v368_v2 = vadd.f32 %v367_v62, %v291_v33 }
 0x13d   :  { %v405_v3 = vadd.f32 %v404_v1, %v390_v63  ;;  %v369_v4 = vadd.f32 %v368_v2, %v294_v39 }
 0x13f   :  { %v406_v6 = vadd.f32 %v405_v3, %v391_v0  ;;  %v370_v7 = vadd.f32 %v756_v28, %v369_v4 }
 0x141   :  { %v407_v9 = vadd.f32 %v406_v6, %v392_v5  ;;  %v371_v10 = vadd.f32 %v758_v35, %v370_v7 }
 0x143   :  { %v408_v12 = vadd.f32 %v407_v9, %v393_v8  ;;  %v372_v13 = vrot.slane %v371_v10, 4 }
 0x145   :  { %v409_v14 = vadd.f32 %v408_v12, %v394_v11  ;;  %v373_v15 = vadd.f32 %v372_v13, %v371_v10 }
 0x147   :  { %v410_v16 = vrot.slane %v409_v14, 4  ;;  %v374_v17 = vrot.slane %v373_v15, 2 }
 0x149   :  { %v411_v18 = vadd.f32 %v410_v16, %v409_v14  ;;  %v375_v19 = vadd.f32 %v374_v17, %v373_v15 }
 0x14b   :  { %v412_v20 = vrot.slane %v411_v18, 2  ;;  %v376_v21 = vrot.slane %v375_v19, 1 }
 0x14d   :  { %v413_v22 = vadd.f32 %v412_v20, %v411_v18  ;;  %v377_v23 = vadd.f32 %v376_v21, %v375_v19 }
 0x14f   :  { %v414_v24 = vrot.slane %v413_v22, 1  ;;  %378 = vst [vmem:[#allocation8] sm:$0x1] %v377_v23 }
 0x150   :  { %645 = shalt.err (!%p642_p0)
}
 0x151   :  { %s646_s8 = scalar_lea.hbm %s834_s3, 16 }
 0x152   :  { %p647_p1 = scmp.ne.s32.totalorder %s834_s3, %s646_s8  ;;  %p650_p2 = scmp.lt.u32.totalorder %s646_s8, %s834_s3 }
 0x154   :  { %p652_p3 = pnand %p650_p2, %p647_p1 }
 0x156   :  { %655 = shalt.err (!%p652_p3)
}
 0x157   :  { %438 = dma.vmem_to_hbm [thread:$0]  %s436_s27, 16, %s834_s3, [#allocation9]   ;;  %v415_v25 = vadd.f32 %v414_v24, %v413_v22 }
 0x158   :  { %s656_s1 = scalar_lea.vmem %s799_s29, 16  ;;  %s660_s14 = scalar_lea.vmem %s799_s29, 32 }
 0x159   :  { %416 = vst [vmem:[#allocation10] sm:$0x1] %v415_v25  ;;  %p657_p4 = scmp.ne.s32.totalorder %s799_s29, %s656_s1  ;;  %p661_p5 = scmp.lt.s32.totalorder %s799_s29, %s799_s29 }
 0x15a   :  { %p662_p6 = scmp.lt.s32.totalorder %s660_s14, %s656_s1 }
 0x15c   :  { %p663_p7 = por %p662_p6, %p661_p5 }
 0x15e   :  { %p664_p8 = pnand %p663_p7, %p657_p4 }
 0x160   :  { %667 = shalt.err (!%p664_p8)
}
 0x161   :  { %s668_s17 = scalar_lea.hbm %s835_s4, 16 }
 0x162   :  { %p669_p9 = scmp.ne.s32.totalorder %s835_s4, %s668_s17  ;;  %p672_p10 = scmp.lt.u32.totalorder %s668_s17, %s835_s4 }
 0x164   :  { %p674_p11 = pnand %p672_p10, %p669_p9 }
 0x166   :  { %677 = shalt.err (!%p674_p11)
}
 0x167   :  { %448 = dma.vmem_to_hbm [thread:$0]  %s799_s29, 16, %s835_s4, [#allocation9]  }
 0x168   :  { %682 = dma.done.wait [#allocation4], 2048  }
 0x169   :  { %683 = vsyncadd [#allocation4], 4294965248 }
 0x16a   :  { %684 = dma.done.wait [#allocation9], 32  }
 0x16b   :  { %685 = vsyncadd [#allocation9], 4294967264 }
 0x16c   :  { %458 = vsyncpa [#allocation3], 1 }
 0x16d   :  { %459 = vsyncpa [#allocation6], 1 }
 0x16e   :  { %460 = vsyncpa [#allocation4], 1 }
 0x16f   :  { %461 = vsyncpa [#allocation9], 1 }

</bundles_post_ra>
